<compile_context>
chip_gen: v7x
topology: tpu7x:2x2x1
jax: 0.10.0
libtpu: 0.0.40
codegen_flags: <defaults>
</compile_context>

<pallas_src>
import functools

import jax
import jax.numpy as jnp
from jax.experimental import pallas as pl
from jax.experimental.pallas import tpu as pltpu


INPUT_SIZE = 64
HIDDEN_SIZE = 128
SUBLANE = 8    # f32 sublane multiple
LANE = 128     # lane width


def _rnn_kernel(x_ref, wih_ref, whh_ref, b_ref, h_out_ref, *, seq_len, batch_p):
    # x_ref:     (S*Bp, Ip)  all timesteps, time-major rows (lane-dense, Ip=128)
    # wih_ref:   (Ip, H)     W_ih^T, zero-padded rows for the padded features
    # whh_ref:   (H, H)      W_hh^T
    # b_ref:     (1, H)      b_ih + b_hh
    # h_out_ref: (Bp, H)     final hidden state
    wih = wih_ref[...]
    bias = b_ref[...]

    # Step 0: h_0 == 0, so h_1 = tanh(x_0 @ W_ih^T + b).  Only a small
    # (Bp,128)@(128,128) matmul sits in front of the serial chain, and one
    # hh-matmul is eliminated from it entirely.
    pre0 = jnp.dot(x_ref[0:batch_p, :], wih, preferred_element_type=jnp.float32) + bias
    h = jnp.tanh(pre0)

    whh = whh_ref[...]  # hoisted: loop-invariant RHS of every recurrence matmul

    # Input projection for timesteps 1..S-1 in one batched MXU call.  Step t
    # only consumes its slice after step t-1's hh-matmul, so this is off the
    # serial critical path and can overlap the first recurrence steps.
    pre_rest = (
        jnp.dot(x_ref[batch_p:, :], wih, preferred_element_type=jnp.float32) + bias
    )  # ((S-1)*Bp, H)

    # Fully unrolled serial recurrence.  Per-step critical path: one
    # (Bp,128)@(128,128) matmul + add + tanh (single EUP op).
    for t in range(1, seq_len):
        pre_t = pre_rest[(t - 1) * batch_p : t * batch_p, :]  # static, sublane-aligned
        h = jnp.tanh(pre_t + jnp.dot(h, whh, preferred_element_type=jnp.float32))

    h_out_ref[...] = h


def rnn_forward(x, w_ih, w_hh, b_ih, b_hh):
    """x: (S, B, 64) float32. Returns the final hidden state, shape (B, 128)."""
    S, B, I = x.shape
    H = w_ih.shape[0]

    # Pad batch to the f32 sublane multiple and features to the lane width so
    # every load/store is a full, unmasked vreg.
    Bp = pl.cdiv(B, SUBLANE) * SUBLANE
    Ip = pl.cdiv(I, LANE) * LANE

    x_p = jnp.pad(x, ((0, 0), (0, Bp - B), (0, Ip - I)))
    x2d = x_p.reshape(S * Bp, Ip)                       # time-major flattened rows

    wih_t = jnp.pad(w_ih.T, ((0, Ip - I), (0, 0)))      # (Ip, H): zero rows for pad lanes
    whh_t = w_hh.T                                      # (H, H)
    bias = (b_ih + b_hh).reshape(1, H)                  # fused bias

    kernel = functools.partial(_rnn_kernel, seq_len=S, batch_p=Bp)

    # Grid-less single invocation: the whole problem (~130 KB) lives in VMEM.
    h_padded = pl.pallas_call(
        kernel,
        out_shape=jax.ShapeDtypeStruct((Bp, H), jnp.float32),
        in_specs=[
            pl.BlockSpec(memory_space=pltpu.MemorySpace.VMEM),  # x (all timesteps)
            pl.BlockSpec(memory_space=pltpu.MemorySpace.VMEM),  # W_ih^T (padded)
            pl.BlockSpec(memory_space=pltpu.MemorySpace.VMEM),  # W_hh^T
            pl.BlockSpec(memory_space=pltpu.MemorySpace.VMEM),  # fused bias
        ],
        out_specs=pl.BlockSpec(memory_space=pltpu.MemorySpace.VMEM),
    )(x2d, wih_t, whh_t, bias)

    return h_padded[:B]  # (B, H), matching the PyTorch module's forward output


def _rnn_reference(x, w_ih, w_hh, b_ih, b_hh):
    """Pure-JAX reference of the PyTorch forward (final hidden state, (B, H))."""
    S, B, _ = x.shape
    H = w_ih.shape[0]
    h0 = jnp.zeros((B, H), jnp.float32)

    def step(h, x_t):
        h_new = jnp.tanh(x_t @ w_ih.T + b_ih + h @ w_hh.T + b_hh)
        return h_new, None

    h_final, _ = jax.lax.scan(step, h0, x)
    return h_final


if __name__ == "__main__":
    key = jax.random.PRNGKey(0)
    k_x, k_wih, k_whh, k_bih, k_bhh = jax.random.split(key, 5)

    SEQ, BATCH = 8, 2
    # PyTorch nn.Linear default init: U(-1/sqrt(fan_in), 1/sqrt(fan_in))
    bound_ih = 1.0 / (INPUT_SIZE ** 0.5)
    bound_hh = 1.0 / (HIDDEN_SIZE ** 0.5)

    x = jax.random.normal(k_x, (SEQ, BATCH, INPUT_SIZE), dtype=jnp.float32)
    w_ih = jax.random.uniform(k_wih, (HIDDEN_SIZE, INPUT_SIZE), jnp.float32, -bound_ih, bound_ih)
    w_hh = jax.random.uniform(k_whh, (HIDDEN_SIZE, HIDDEN_SIZE), jnp.float32, -bound_hh, bound_hh)
    b_ih = jax.random.uniform(k_bih, (HIDDEN_SIZE,), jnp.float32, -bound_ih, bound_ih)
    b_hh = jax.random.uniform(k_bhh, (HIDDEN_SIZE,), jnp.float32, -bound_hh, bound_hh)

    hidden = rnn_forward(x, w_ih, w_hh, b_ih, b_hh)
    hidden = jax.block_until_ready(hidden)

    ref = _rnn_reference(x, w_ih, w_hh, b_ih, b_hh)
    assert hidden.shape == (BATCH, HIDDEN_SIZE)
    assert jnp.allclose(hidden, ref, atol=1e-5, rtol=1e-5)

    print("KERNEL_OK")
</pallas_src>

<mosaic_0001>
module attributes {stable_mosaic.version = 11 : i64} {
  func.func @_rnn_kernel(%arg0: memref<64x128xf32, #tpu.memory_space<vmem>>, %arg1: memref<128x128xf32, #tpu.memory_space<vmem>>, %arg2: memref<128x128xf32, #tpu.memory_space<vmem>>, %arg3: memref<1x128xf32, #tpu.memory_space<vmem>>, %arg4: memref<8x128xf32, #tpu.memory_space<vmem>>) attributes {dimension_semantics = [], scalar_prefetch = 0 : i64, scratch_operands = 0 : i64, tpu.core_type = #tpu.core_type<tc>} {
    %c0 = arith.constant 0 : index
    %c0_0 = arith.constant 0 : index
    %0 = vector.load %arg1[%c0, %c0_0] : memref<128x128xf32, #tpu.memory_space<vmem>>, vector<128x128xf32>
    %c0_1 = arith.constant 0 : index
    %c0_2 = arith.constant 0 : index
    %1 = vector.load %arg3[%c0_1, %c0_2] : memref<1x128xf32, #tpu.memory_space<vmem>>, vector<1x128xf32>
    %c0_3 = arith.constant 0 : index
    %c0_4 = arith.constant 0 : index
    %2 = vector.load %arg0[%c0_3, %c0_4] : memref<64x128xf32, #tpu.memory_space<vmem>>, vector<8x128xf32>
    %cst = arith.constant dense<0.000000e+00> : vector<8x128xf32>
    %3 = tpu.matmul %2, %0, %cst {dimension_numbers = #tpu.dot_dimension_numbers<[1], [0], [0], [1], [0, 0, 1, 1], [], []>} : vector<8x128xf32>, vector<128x128xf32>, vector<8x128xf32> -> vector<8x128xf32>
    %4 = vector.broadcast %1 : vector<1x128xf32> to vector<8x128xf32>
    %5 = arith.addf %3, %4 : vector<8x128xf32>
    %6 = math.tanh %5 : vector<8x128xf32>
    %c0_5 = arith.constant 0 : index
    %c0_6 = arith.constant 0 : index
    %7 = vector.load %arg2[%c0_5, %c0_6] : memref<128x128xf32, #tpu.memory_space<vmem>>, vector<128x128xf32>
    %c8 = arith.constant 8 : index
    %c0_7 = arith.constant 0 : index
    %8 = vector.load %arg0[%c8, %c0_7] : memref<64x128xf32, #tpu.memory_space<vmem>>, vector<56x128xf32>
    %cst_8 = arith.constant dense<0.000000e+00> : vector<56x128xf32>
    %9 = tpu.matmul %8, %0, %cst_8 {dimension_numbers = #tpu.dot_dimension_numbers<[1], [0], [0], [1], [0, 0, 1, 1], [], []>} : vector<56x128xf32>, vector<128x128xf32>, vector<56x128xf32> -> vector<56x128xf32>
    %10 = vector.broadcast %1 : vector<1x128xf32> to vector<56x128xf32>
    %11 = arith.addf %9, %10 : vector<56x128xf32>
    %12 = vector.extract_strided_slice %11 {offsets = [0, 0], sizes = [8, 128], strides = [1, 1]} : vector<56x128xf32> to vector<8x128xf32>
    %cst_9 = arith.constant dense<0.000000e+00> : vector<8x128xf32>
    %13 = tpu.matmul %6, %7, %cst_9 {dimension_numbers = #tpu.dot_dimension_numbers<[1], [0], [0], [1], [0, 0, 1, 1], [], []>} : vector<8x128xf32>, vector<128x128xf32>, vector<8x128xf32> -> vector<8x128xf32>
    %14 = arith.addf %12, %13 : vector<8x128xf32>
    %15 = math.tanh %14 : vector<8x128xf32>
    %16 = vector.extract_strided_slice %11 {offsets = [8, 0], sizes = [8, 128], strides = [1, 1]} : vector<56x128xf32> to vector<8x128xf32>
    %cst_10 = arith.constant dense<0.000000e+00> : vector<8x128xf32>
    %17 = tpu.matmul %15, %7, %cst_10 {dimension_numbers = #tpu.dot_dimension_numbers<[1], [0], [0], [1], [0, 0, 1, 1], [], []>} : vector<8x128xf32>, vector<128x128xf32>, vector<8x128xf32> -> vector<8x128xf32>
    %18 = arith.addf %16, %17 : vector<8x128xf32>
    %19 = math.tanh %18 : vector<8x128xf32>
    %20 = vector.extract_strided_slice %11 {offsets = [16, 0], sizes = [8, 128], strides = [1, 1]} : vector<56x128xf32> to vector<8x128xf32>
    %cst_11 = arith.constant dense<0.000000e+00> : vector<8x128xf32>
    %21 = tpu.matmul %19, %7, %cst_11 {dimension_numbers = #tpu.dot_dimension_numbers<[1], [0], [0], [1], [0, 0, 1, 1], [], []>} : vector<8x128xf32>, vector<128x128xf32>, vector<8x128xf32> -> vector<8x128xf32>
    %22 = arith.addf %20, %21 : vector<8x128xf32>
    %23 = math.tanh %22 : vector<8x128xf32>
    %24 = vector.extract_strided_slice %11 {offsets = [24, 0], sizes = [8, 128], strides = [1, 1]} : vector<56x128xf32> to vector<8x128xf32>
    %cst_12 = arith.constant dense<0.000000e+00> : vector<8x128xf32>
    %25 = tpu.matmul %23, %7, %cst_12 {dimension_numbers = #tpu.dot_dimension_numbers<[1], [0], [0], [1], [0, 0, 1, 1], [], []>} : vector<8x128xf32>, vector<128x128xf32>, vector<8x128xf32> -> vector<8x128xf32>
    %26 = arith.addf %24, %25 : vector<8x128xf32>
    %27 = math.tanh %26 : vector<8x128xf32>
    %28 = vector.extract_strided_slice %11 {offsets = [32, 0], sizes = [8, 128], strides = [1, 1]} : vector<56x128xf32> to vector<8x128xf32>
    %cst_13 = arith.constant dense<0.000000e+00> : vector<8x128xf32>
    %29 = tpu.matmul %27, %7, %cst_13 {dimension_numbers = #tpu.dot_dimension_numbers<[1], [0], [0], [1], [0, 0, 1, 1], [], []>} : vector<8x128xf32>, vector<128x128xf32>, vector<8x128xf32> -> vector<8x128xf32>
    %30 = arith.addf %28, %29 : vector<8x128xf32>
    %31 = math.tanh %30 : vector<8x128xf32>
    %32 = vector.extract_strided_slice %11 {offsets = [40, 0], sizes = [8, 128], strides = [1, 1]} : vector<56x128xf32> to vector<8x128xf32>
    %cst_14 = arith.constant dense<0.000000e+00> : vector<8x128xf32>
    %33 = tpu.matmul %31, %7, %cst_14 {dimension_numbers = #tpu.dot_dimension_numbers<[1], [0], [0], [1], [0, 0, 1, 1], [], []>} : vector<8x128xf32>, vector<128x128xf32>, vector<8x128xf32> -> vector<8x128xf32>
    %34 = arith.addf %32, %33 : vector<8x128xf32>
    %35 = math.tanh %34 : vector<8x128xf32>
    %36 = vector.extract_strided_slice %11 {offsets = [48, 0], sizes = [8, 128], strides = [1, 1]} : vector<56x128xf32> to vector<8x128xf32>
    %cst_15 = arith.constant dense<0.000000e+00> : vector<8x128xf32>
    %37 = tpu.matmul %35, %7, %cst_15 {dimension_numbers = #tpu.dot_dimension_numbers<[1], [0], [0], [1], [0, 0, 1, 1], [], []>} : vector<8x128xf32>, vector<128x128xf32>, vector<8x128xf32> -> vector<8x128xf32>
    %38 = arith.addf %36, %37 : vector<8x128xf32>
    %39 = math.tanh %38 : vector<8x128xf32>
    %c0_16 = arith.constant 0 : index
    %c0_17 = arith.constant 0 : index
    %40 = vector.load %arg4[%c0_16, %c0_17] : memref<8x128xf32, #tpu.memory_space<vmem>>, vector<8x128xf32>
    tpu.vector_store %arg4[%c0_16, %c0_17], %39 {strides = array<i32>} : memref<8x128xf32, #tpu.memory_space<vmem>>, vector<8x128xf32>,
    return
  }
}

</mosaic_0001>

<bundles_post_ra>
// kernel: tpu_custom_call.1
= control target key start
LH: loop header
LB: loop body
LE: loop exit
PB: predicated region body
PF: predicated region fallthrough
CT: control target
= control target key end

     0   :  { %9 = vsyncpa [#allocation3], 0  ;;  %s1944_s0 = inlined_call_operand.hbm [shape: f32[64,128], index: 0, kind: input, shape index: {}]   ;;  %s1945_s1 = inlined_call_operand.hbm [shape: f32[128,128], index: 1, kind: input, shape index: {}]   ;;  %s1946_s2 = inlined_call_operand.hbm [shape: f32[128,128], index: 2, kind: input, shape index: {}]   ;;  %s1947_s3 = inlined_call_operand.vmem [shape: f32[1,128], index: 3, kind: input, shape index: {}]   ;;  %s1948_s4 = inlined_call_operand.hbm [shape: f32[8,128], index: 4, kind: output, shape index: {}]  }
   0x1   :  { %10 = vsyncpa [#allocation6], 0 }
   0x2   :  { %11 = vsyncpa [#allocation4], 0  ;;  %s1642_s15 = smov [#allocation5]   ;;  %s1643_s17 = smov [#allocation2]  }
   0x3   :  { %s29_s16 = sshll.u32 %s1642_s15, 4  ;;  %s17_s18 = sshll.u32 %s1643_s17, 4  ;;  %s30_s16 = int_to_ptr.vmem [resolvable:$true] %s29_s16  ;;  %s1676_s18 = int_to_ptr.vmem [resolvable:$true] %s17_s18 }
   0x4   :  { %s1548_s21 = scalar_lea.hbm %s1945_s1, 2048 }
   0x5   :  { %p1549_p0 = scmp.ne.s32.totalorder %s1945_s1, %s1548_s21  ;;  %p1552_p1 = scmp.lt.u32.totalorder %s1548_s21, %s1945_s1 }
   0x7   :  { %p1554_p2 = pnand %p1552_p1, %p1549_p0 }
   0x9   :  { %1557 = shalt.err (!%p1554_p2)
}
   0xa   :  { %s1558_s26 = scalar_lea.vmem %s30_s16, 2048  ;;  %p1563_p4 = scmp.lt.s32.totalorder %s30_s16, %s30_s16 }
   0xb   :  { %p1559_p3 = scmp.ne.s32.totalorder %s30_s16, %s1558_s26  ;;  %p1564_p5 = scmp.lt.s32.totalorder %s1558_s26, %s1558_s26 }
   0xd   :  { %p1565_p6 = por %p1564_p5, %p1563_p4 }
   0xf   :  { %p1566_p7 = pnand %p1565_p6, %p1559_p3 }
  0x11   :  { %1569 = shalt.err (!%p1566_p7)
}
  0x12   :  { %s1644_s27 = smov 128   ;;  %s1645_s28 = smov 8  }
  0x13   :  { %35 = dma.hbm_to_vmem [thread:$0]  %s1945_s1, 2048, %s30_s16, [#allocation6], %s1644_s27, %s1644_s27, %s1645_s28  }
  0x14   :  { %s1570_s7 = scalar_lea.hbm %s1944_s0, 1024 }
  0x15   :  { %p1571_p8 = scmp.ne.s32.totalorder %s1944_s0, %s1570_s7  ;;  %p1574_p9 = scmp.lt.u32.totalorder %s1570_s7, %s1944_s0 }
  0x17   :  { %p1576_p10 = pnand %p1574_p9, %p1571_p8 }
  0x19   :  { %1579 = shalt.err (!%p1576_p10)
}
  0x1a   :  { %s1580_s12 = scalar_lea.vmem %s1676_s18, 1024  ;;  %p1585_p12 = scmp.lt.s32.totalorder %s1676_s18, %s1676_s18 }
  0x1b   :  { %p1581_p11 = scmp.ne.s32.totalorder %s1676_s18, %s1580_s12  ;;  %p1586_p13 = scmp.lt.s32.totalorder %s1580_s12, %s1580_s12 }
  0x1d   :  { %p1587_p0 = por %p1586_p13, %p1585_p12 }
  0x1f   :  { %p1588_p1 = pnand %p1587_p0, %p1581_p11 }
  0x21   :  { %1591 = shalt.err (!%p1588_p1)
}
  0x22   :  { %23 = dma.hbm_to_vmem [thread:$0]  %s1944_s0, 1024, %s1676_s18, [#allocation3], %s1644_s27, %s1644_s27, %s1645_s28  }
  0x23   :  { %s1646_s14 = smov [#allocation7]   ;;  %s1592_s19 = scalar_lea.hbm %s1946_s2, 2048 }
  0x24   :  { %s41_s15 = sshll.u32 %s1646_s14, 4  ;;  %p1593_p2 = scmp.ne.s32.totalorder %s1946_s2, %s1592_s19  ;;  %s42_s15 = int_to_ptr.vmem [resolvable:$true] %s41_s15 }
  0x25   :  { %p1596_p3 = scmp.lt.u32.totalorder %s1592_s19, %s1946_s2 }
  0x27   :  { %p1598_p4 = pnand %p1596_p3, %p1593_p2 }
  0x29   :  { %1601 = shalt.err (!%p1598_p4)
}
  0x2a   :  { %s1602_s24 = scalar_lea.vmem %s42_s15, 2048  ;;  %p1607_p6 = scmp.lt.s32.totalorder %s42_s15, %s42_s15 }
  0x2b   :  { %p1603_p5 = scmp.ne.s32.totalorder %s42_s15, %s1602_s24  ;;  %p1608_p7 = scmp.lt.s32.totalorder %s1602_s24, %s1602_s24 }
  0x2d   :  { %p1609_p8 = por %p1608_p7, %p1607_p6 }
  0x2f   :  { %p1610_p9 = pnand %p1609_p8, %p1603_p5 }
  0x31   :  { %1613 = shalt.err (!%p1610_p9)
}
  0x32   :  { %47 = dma.hbm_to_vmem [thread:$0]  %s1946_s2, 2048, %s42_s15, [#allocation6], %s1644_s27, %s1644_s27, %s1645_s28  }
  0x33   :  { %1636 = dma.done.wait [#allocation3], 1024  }
  0x34   :  { %1637 = vsyncadd [#allocation3], 4294966272 }
  0x35   :  { %1638 = dma.done.wait [#allocation6], 4096  }
  0x36   :  { %1639 = vsyncadd [#allocation6], 4294963200  ;;  %v1647_v0 = vmov 0.0|0.0   ;;  %vm1648_vm0 = vmmov 0   ;;  %v1649_v1 = vmov 0.0   ;;  %v59_v2 = vld [vmem:[#allocation5] sm:$0xff] }
  0x37   :  { %1291 = vmatprep.subr.bf16.mxu0 %v1647_v0  ;;  %990 = vmatprep.mubr.msk.f32.mxu0 %vm1648_vm0, %v1649_v1  ;;  %v60_v3 = vld [vmem:[#allocation5 + $0x8] sm:$0xff]  ;;  %v61_v4 = vld [vmem:[#allocation5 + $0x10] sm:$0xff]  ;;  %v62_v6 = vld [vmem:[#allocation5 + $0x18] sm:$0xff] }
  0x38   :  { %1387 = vmatprep.subr.bf16.mxu1 %v1647_v0  ;;  %1148 = vmatprep.mubr.msk.f32.mxu1 %vm1648_vm0, %v1649_v1  ;;  %v1734_v5 = vpack.c.bf16 %v60_v3, %v59_v2  ;;  %v1737_v7 = vpack.c.bf16 %v62_v6, %v61_v4  ;;  %v63_v8 = vld [vmem:[#allocation5 + $0x20] sm:$0xff]  ;;  %v64_v9 = vld [vmem:[#allocation5 + $0x28] sm:$0xff]  ;;  %v65_v13 = vld [vmem:[#allocation5 + $0x30] sm:$0xff] }
  0x39   :  { %v154_v10 = vld [vmem:[#allocation7] sm:$0xff]  ;;  %v155_v11 = vld [vmem:[#allocation7 + $0x8] sm:$0xff]  ;;  %v1298_v12 = vpack.c.bf16 %v64_v9, %v63_v8  ;;  %v66_v15 = vld [vmem:[#allocation5 + $0x38] sm:$0xff] }
  0x3a   :  { %1293 = vmatpush3.bf16.msra.mxu0 %v1734_v5  ;;  %v1741_v14 = vpack.c.bf16 %v155_v11, %v154_v10  ;;  %v156_v16 = vld [vmem:[#allocation7 + $0x10] sm:$0xff]  ;;  %v157_v17 = vld [vmem:[#allocation7 + $0x18] sm:$0xff]  ;;  %v1301_v18 = vpack.c.bf16 %v66_v15, %v65_v13  ;;  %v67_v19 = vld [vmem:[#allocation5 + $0x40] sm:$0xff] }
  0x3b   :  { %1294 = vmatprep.subr.bf16.mxu0 %v1647_v0  ;;  %v1746_v20 = vpack.c.bf16 %v157_v17, %v156_v16  ;;  %v68_v21 = vld [vmem:[#allocation5 + $0x48] sm:$0xff]  ;;  %v158_v22 = vld [vmem:[#allocation7 + $0x20] sm:$0xff]  ;;  %v69_v25 = vld [vmem:[#allocation5 + $0x50] sm:$0xff] }
  0x3c   :  { %1389 = vmatpush3.bf16.msra.mxu1 %v1741_v14  ;;  %v159_v23 = vld [vmem:[#allocation7 + $0x28] sm:$0xff]  ;;  %v1304_v24 = vpack.c.bf16 %v68_v21, %v67_v19  ;;  %v70_v27 = vld [vmem:[#allocation5 + $0x58] sm:$0xff]  ;;  %v160_v28 = vld [vmem:[#allocation7 + $0x30] sm:$0xff] }
  0x3d   :  { %1390 = vmatprep.subr.bf16.mxu1 %v1647_v0  ;;  %v1751_v26 = vpack.c.bf16 %v159_v23, %v158_v22  ;;  %v161_v29 = vld [vmem:[#allocation7 + $0x38] sm:$0xff]  ;;  %v1307_v30 = vpack.c.bf16 %v70_v27, %v69_v25  ;;  %v71_v31 = vld [vmem:[#allocation5 + $0x60] sm:$0xff]  ;;  %v72_v33 = vld [vmem:[#allocation5 + $0x68] sm:$0xff] }
  0x3e   :  { %1296 = vmatpush3.bf16.msra.mxu0 %v1737_v7  ;;  %v1756_v32 = vpack.c.bf16 %v161_v29, %v160_v28  ;;  %v162_v34 = vld [vmem:[#allocation7 + $0x40] sm:$0xff]  ;;  %v163_v35 = vld [vmem:[#allocation7 + $0x48] sm:$0xff]  ;;  %v1310_v36 = vpack.c.bf16 %v72_v33, %v71_v31  ;;  %v73_v38 = vld [vmem:[#allocation5 + $0x70] sm:$0xff] }
  0x3f   :  { %1297 = vmatprep.subr.bf16.mxu0 %v1647_v0  ;;  %v1761_v37 = vpack.c.bf16 %v163_v35, %v162_v34  ;;  %v74_v39 = vld [vmem:[#allocation5 + $0x78] sm:$0xff]  ;;  %v76_v41 = vld [vmem:[#allocation2] sm:$0xff]  ;;  %v170_v42 = vld [vmem:[#allocation2 + $0x8] sm:$0xff] }
  0x40   :  { %1392 = vmatpush3.bf16.msra.mxu1 %v1746_v20  ;;  %v1313_v40 = vpack.c.bf16 %v74_v39, %v73_v38  ;;  %v171_v43 = vld [vmem:[#allocation2 + $0x10] sm:$0xff]  ;;  %v172_v44 = vld [vmem:[#allocation2 + $0x18] sm:$0xff]  ;;  %v173_v45 = vld [vmem:[#allocation2 + $0x20] sm:$0xff] }
  0x41   :  { %1393 = vmatprep.subr.bf16.mxu1 %v1647_v0  ;;  %v174_v46 = vld [vmem:[#allocation2 + $0x28] sm:$0xff]  ;;  %v164_v47 = vld [vmem:[#allocation7 + $0x50] sm:$0xff]  ;;  %v165_v48 = vld [vmem:[#allocation7 + $0x58] sm:$0xff] }
  0x42   :  { %1299 = vmatpush3.bf16.msra.mxu0 %v1298_v12  ;;  %v1798_v49 = vpack.c.bf16 %v165_v48, %v164_v47  ;;  %v175_v50 = vld [vmem:[#allocation2 + $0x30] sm:$0xff]  ;;  %v166_v51 = vld [vmem:[#allocation7 + $0x60] sm:$0xff]  ;;  %v167_v52 = vld [vmem:[#allocation7 + $0x68] sm:$0xff] }
  0x43   :  { %1300 = vmatprep.subr.bf16.mxu0 %v1647_v0  ;;  %v1805_v53 = vpack.c.bf16 %v167_v52, %v166_v51  ;;  %v168_v54 = vld [vmem:[#allocation7 + $0x70] sm:$0xff]  ;;  %v169_v55 = vld [vmem:[#allocation7 + $0x78] sm:$0xff]  ;;  %v1825_v58 = vld [vmem:[%s1947_s3] ss:$0 sm:$0xff]  ;;  %s1650_s3 = smov [#allocation8]  }
  0x44   :  { %1395 = vmatpush3.bf16.msra.mxu1 %v1751_v26  ;;  %v176_v56 = vld [vmem:[#allocation2 + $0x38] sm:$0xff]  ;;  %v1811_v57 = vpack.c.bf16 %v169_v55, %v168_v54  ;;  %s788_s26 = sshll.u32 %s1650_s3, 4  ;;  %s789_s26 = int_to_ptr.vmem [resolvable:$true] %s788_s26 }
  0x45   :  { %1396 = vmatprep.subr.bf16.mxu1 %v1647_v0  ;;  %s1614_s27 = scalar_lea.vmem %s789_s26, 128  ;;  %p1619_p11 = scmp.lt.s32.totalorder %s789_s26, %s789_s26 }
  0x46   :  { %1302 = vmatpush3.bf16.msra.mxu0 %v1301_v18  ;;  %p1615_p10 = scmp.ne.s32.totalorder %s789_s26, %s1614_s27  ;;  %p1620_p12 = scmp.lt.s32.totalorder %s1614_s27, %s1614_s27 }
  0x47   :  { %1303 = vmatprep.subr.bf16.mxu0 %v1647_v0 }
  0x48   :  { %1398 = vmatpush3.bf16.msra.mxu1 %v1756_v32  ;;  %p1621_p13 = por %p1620_p12, %p1619_p11 }
  0x49   :  { %1399 = vmatprep.subr.bf16.mxu1 %v1647_v0 }
  0x4a   :  { %1305 = vmatpush3.bf16.msra.mxu0 %v1304_v24  ;;  %p1622_p0 = pnand %p1621_p13, %p1615_p10 }
  0x4b   :  { %1306 = vmatprep.subr.bf16.mxu0 %v1647_v0 }
  0x4c   :  { %1401 = vmatpush3.bf16.msra.mxu1 %v1761_v37 }
  0x4d   :  { %1402 = vmatprep.subr.bf16.mxu1 %v1647_v0 }
  0x4e   :  { %1308 = vmatpush3.bf16.msra.mxu0 %v1307_v30 }
  0x4f   :  { %1309 = vmatprep.subr.bf16.mxu0 %v1647_v0 }
  0x50   :  { %1404 = vmatpush3.bf16.msra.mxu1 %v1798_v49 }
  0x51   :  { %1405 = vmatprep.subr.bf16.mxu1 %v1647_v0 }
  0x52   :  { %1311 = vmatpush3.bf16.msra.mxu0 %v1310_v36 }
  0x53   :  { %1312 = vmatprep.subr.bf16.mxu0 %v1647_v0 }
  0x54   :  { %1407 = vmatpush3.bf16.msra.mxu1 %v1805_v53 }
  0x55   :  { %1408 = vmatprep.subr.bf16.mxu1 %v1647_v0 }
  0x56   :  { %1314 = vmatpush3.bf16.msra.mxu0 %v1313_v40 }
  0x57   :  { %1315 = vmatprep.subr.bf16.mxu0 %v1647_v0 }
  0x58   :  { %1410 = vmatpush3.bf16.msra.mxu1 %v1811_v57 }
  0x59   :  { %991 = vmatmul.mubr.f32.vlgmr.msra.gmra.mrb[0].mxu0 %v76_v41  ;;  %1411 = vmatprep.subr.bf16.mxu1 %v1647_v0 }
  0x5a   :  { %1317 = vmatpush3.bf16.msra.mxu0 %v1734_v5  ;;  %1025 = vmatprep.mubr.msk.f32.mxu0 %vm1648_vm0, %v1649_v1 }
  0x5b   :  { %1318 = vmatprep.subr.bf16.mxu0 %v1647_v0 }
  0x5e   :  { %1320 = vmatpush3.bf16.msra.mxu0 %v1737_v7 }
  0x5f   :  { %1321 = vmatprep.subr.bf16.mxu0 %v1647_v0 }
  0x62   :  { %1323 = vmatpush3.bf16.msra.mxu0 %v1298_v12 }
  0x63   :  { %1324 = vmatprep.subr.bf16.mxu0 %v1647_v0 }
  0x66   :  { %1326 = vmatpush3.bf16.msra.mxu0 %v1301_v18 }
  0x67   :  { %1327 = vmatprep.subr.bf16.mxu0 %v1647_v0 }
  0x6a   :  { %1329 = vmatpush3.bf16.msra.mxu0 %v1304_v24 }
  0x6b   :  { %1330 = vmatprep.subr.bf16.mxu0 %v1647_v0 }
  0x6e   :  { %1332 = vmatpush3.bf16.msra.mxu0 %v1307_v30 }
  0x6f   :  { %1333 = vmatprep.subr.bf16.mxu0 %v1647_v0 }
  0x72   :  { %1335 = vmatpush3.bf16.msra.mxu0 %v1310_v36 }
  0x73   :  { %1336 = vmatprep.subr.bf16.mxu0 %v1647_v0 }
  0x76   :  { %1338 = vmatpush3.bf16.msra.mxu0 %v1313_v40 }
  0x77   :  { %1339 = vmatprep.subr.bf16.mxu0 %v1647_v0 }
  0x79   :  { %1026 = vmatmul.mubr.f32.vlgmr.msra.gmra.mrb[2].mxu0 %v170_v42 }
  0x7a   :  { %1341 = vmatpush3.bf16.msra.mxu0 %v1741_v14  ;;  %1028 = vmatprep.mubr.msk.f32.mxu0 %vm1648_vm0, %v1649_v1 }
  0x7b   :  { %1342 = vmatprep.subr.bf16.mxu0 %v1647_v0 }
  0x7d   :  { %1029 = vmatmul.mubr.f32.gmra.mrb[4].mxu0 %v171_v43 }
  0x7e   :  { %1344 = vmatpush3.bf16.msra.mxu0 %v1746_v20  ;;  %1031 = vmatprep.mubr.msk.f32.mxu0 %vm1648_vm0, %v1649_v1 }
  0x7f   :  { %1345 = vmatprep.subr.bf16.mxu0 %v1647_v0 }
  0x81   :  { %1032 = vmatmul.mubr.f32.gmra.mrb[6].mxu0 %v172_v44 }
  0x82   :  { %1347 = vmatpush3.bf16.msra.mxu0 %v1751_v26  ;;  %1034 = vmatprep.mubr.msk.f32.mxu0 %vm1648_vm0, %v1649_v1 }
  0x83   :  { %1348 = vmatprep.subr.bf16.mxu0 %v1647_v0 }
  0x85   :  { %1035 = vmatmul.mubr.f32.gmra.mrb[8].mxu0 %v173_v45 }
  0x86   :  { %1350 = vmatpush3.bf16.msra.mxu0 %v1756_v32  ;;  %1037 = vmatprep.mubr.msk.f32.mxu0 %vm1648_vm0, %v1649_v1 }
  0x87   :  { %1351 = vmatprep.subr.bf16.mxu0 %v1647_v0 }
  0x89   :  { %1038 = vmatmul.mubr.f32.gmra.mrb[10].mxu0 %v174_v46 }
  0x8a   :  { %1353 = vmatpush3.bf16.msra.mxu0 %v1761_v37  ;;  %1040 = vmatprep.mubr.msk.f32.mxu0 %vm1648_vm0, %v1649_v1 }
  0x8b   :  { %1354 = vmatprep.subr.bf16.mxu0 %v1647_v0 }
  0x8d   :  { %1041 = vmatmul.mubr.f32.gmra.mrb[12].mxu0 %v175_v50 }
  0x8e   :  { %1356 = vmatpush3.bf16.msra.mxu0 %v1798_v49  ;;  %1043 = vmatprep.mubr.msk.f32.mxu0 %vm1648_vm0, %v1649_v1 }
  0x8f   :  { %1357 = vmatprep.subr.bf16.mxu0 %v1647_v0 }
  0x91   :  { %1044 = vmatmul.mubr.f32.gmra.mrb[14].mxu0 %v176_v56 }
  0x92   :  { %1359 = vmatpush3.bf16.msra.mxu0 %v1805_v53  ;;  %1078 = vmatprep.mubr.msk.f32.mxu0 %vm1648_vm0, %v1649_v1 }
  0x93   :  { %1360 = vmatprep.subr.bf16.mxu0 %v1647_v0 }
  0x96   :  { %1362 = vmatpush3.bf16.msra.mxu0 %v1811_v57 }
  0x97   :  { %1363 = vmatprep.subr.bf16.mxu0 %v1647_v0 }
 0x12c   :  { %v149_v59 = vpop.f32.mrb[0].mxu0 }
 0x12d   :  { %v150_v60 = vadd.f32 %v1825_v58, %v149_v59  ;;  %v992_v61 = vpop.f32.mrb[1].mxu0 }
 0x12f   :  { %1532 = vtanh.f32 %v150_v60 }
 0x139   :  { %v1533_v62 = vpop.eup %1532 }
 0x13a   :  { %1079 = vmatmul.mubr.f32.vlgmr.msra.gmra.mrb[2].mxu0 %v1533_v62 }
 0x13b   :  { %1365 = vmatpush3.bf16.msra.mxu0 %v1741_v14  ;;  %1113 = vmatprep.mubr.msk.f32.mxu0 %vm1648_vm0, %v1649_v1 }
 0x13c   :  { %1366 = vmatprep.subr.bf16.mxu0 %v1647_v0 }
 0x13f   :  { %1368 = vmatpush3.bf16.msra.mxu0 %v1746_v20 }
 0x140   :  { %1369 = vmatprep.subr.bf16.mxu0 %v1647_v0 }
 0x143   :  { %1371 = vmatpush3.bf16.msra.mxu0 %v1751_v26 }
 0x144   :  { %1372 = vmatprep.subr.bf16.mxu0 %v1647_v0 }
 0x147   :  { %1374 = vmatpush3.bf16.msra.mxu0 %v1756_v32 }
 0x148   :  { %1375 = vmatprep.subr.bf16.mxu0 %v1647_v0 }
 0x14b   :  { %1377 = vmatpush3.bf16.msra.mxu0 %v1761_v37 }
 0x14c   :  { %1378 = vmatprep.subr.bf16.mxu0 %v1647_v0 }
 0x14f   :  { %1380 = vmatpush3.bf16.msra.mxu0 %v1798_v49 }
 0x150   :  { %1381 = vmatprep.subr.bf16.mxu0 %v1647_v0 }
 0x153   :  { %1383 = vmatpush3.bf16.msra.mxu0 %v1805_v53 }
 0x154   :  { %v253_v63 = vpop.f32.mrb[6].mxu0  ;;  %1384 = vmatprep.subr.bf16.mxu0 %v1647_v0 }
 0x155   :  { %v1033_v2 = vpop.f32.mrb[7].mxu0  ;;  %v254_v21 = vadd.f32 %v1825_v58, %v253_v63 }
 0x157   :  { %1386 = vmatpush3.bf16.msra.mxu0 %v1811_v57 }
 0x158   :  { %v258_v3 = vpop.f32.mrb[8].mxu0 }
 0x159   :  { %v1036_v4 = vpop.f32.mrb[9].mxu0  ;;  %v259_v27 = vadd.f32 %v1825_v58, %v258_v3 }
 0x15c   :  { %v1845_v5 = vpop.f32.mrb[10].mxu0 }
 0x15d   :  { %v1039_v6 = vpop.f32.mrb[11].mxu0  ;;  %v264_v33 = vadd.f32 %v1825_v58, %v1845_v5 }
 0x160   :  { %v1847_v7 = vpop.f32.mrb[12].mxu0 }
 0x161   :  { %v1042_v8 = vpop.f32.mrb[13].mxu0 }
 0x164   :  { %v1849_v9 = vpop.f32.mrb[14].mxu0 }
 0x165   :  { %v1045_v10 = vpop.f32.mrb[15].mxu0 }
 0x20d   :  { %v343_v11 = vpop.f32.mrb[2].mxu0 }
 0x20e   :  { %v1507_v12 = vadd.f32 %v1825_v58, %v343_v11  ;;  %v1080_v13 = vpop.f32.mrb[3].mxu0 }
 0x210   :  { %1534 = vtanh.f32 %v1507_v12 }
 0x21a   :  { %v1535_v15 = vpop.eup %1534 }
 0x21b   :  { %1114 = vmatmul.mubr.f32.vlgmr.msra.gmra.mrb[4].mxu0 %v1535_v15 }
 0x2ee   :  { %v415_v16 = vpop.f32.mrb[4].mxu0 }
 0x2ef   :  { %v1508_v17 = vadd.f32 %v1825_v58, %v415_v16  ;;  %v1115_v18 = vpop.f32.mrb[5].mxu0 }
 0x2f1   :  { %1536 = vtanh.f32 %v1508_v17 }
 0x2fb   :  { %v1537_v19 = vpop.eup %1536 }
 0x2fc   :  { %1149 = vmatmul.mubr.f32.vlgmr.msra.gmra.mrb[0].mxu1 %v1537_v19 }
 0x2fd   :  { %1413 = vmatpush3.bf16.msra.mxu1 %v1741_v14  ;;  %1183 = vmatprep.mubr.msk.f32.mxu1 %vm1648_vm0, %v1649_v1 }
 0x2fe   :  { %1414 = vmatprep.subr.bf16.mxu1 %v1647_v0 }
 0x301   :  { %1416 = vmatpush3.bf16.msra.mxu1 %v1746_v20 }
 0x302   :  { %1417 = vmatprep.subr.bf16.mxu1 %v1647_v0 }
 0x305   :  { %1419 = vmatpush3.bf16.msra.mxu1 %v1751_v26 }
 0x306   :  { %1420 = vmatprep.subr.bf16.mxu1 %v1647_v0 }
 0x309   :  { %1422 = vmatpush3.bf16.msra.mxu1 %v1756_v32 }
 0x30a   :  { %1423 = vmatprep.subr.bf16.mxu1 %v1647_v0 }
 0x30d   :  { %1425 = vmatpush3.bf16.msra.mxu1 %v1761_v37 }
 0x30e   :  { %1426 = vmatprep.subr.bf16.mxu1 %v1647_v0 }
 0x311   :  { %1428 = vmatpush3.bf16.msra.mxu1 %v1798_v49 }
 0x312   :  { %1429 = vmatprep.subr.bf16.mxu1 %v1647_v0 }
 0x315   :  { %1431 = vmatpush3.bf16.msra.mxu1 %v1805_v53 }
 0x316   :  { %1432 = vmatprep.subr.bf16.mxu1 %v1647_v0 }
 0x319   :  { %1434 = vmatpush3.bf16.msra.mxu1 %v1811_v57 }
 0x31a   :  { %1435 = vmatprep.subr.bf16.mxu1 %v1647_v0 }
 0x3cf   :  { %v487_v22 = vpop.f32.mrb[0].mxu1 }
 0x3d0   :  { %v491_v23 = vadd.f32 %v487_v22, %v254_v21  ;;  %v1150_v24 = vpop.f32.mrb[1].mxu1 }
 0x3d2   :  { %1538 = vtanh.f32 %v491_v23 }
 0x3dc   :  { %v1539_v25 = vpop.eup %1538 }
 0x3dd   :  { %1184 = vmatmul.mubr.f32.vlgmr.msra.gmra.mrb[2].mxu1 %v1539_v25 }
 0x3de   :  { %1437 = vmatpush3.bf16.msra.mxu1 %v1741_v14  ;;  %1218 = vmatprep.mubr.msk.f32.mxu1 %vm1648_vm0, %v1649_v1 }
 0x3df   :  { %1438 = vmatprep.subr.bf16.mxu1 %v1647_v0 }
 0x3e2   :  { %1440 = vmatpush3.bf16.msra.mxu1 %v1746_v20 }
 0x3e3   :  { %1441 = vmatprep.subr.bf16.mxu1 %v1647_v0 }
 0x3e6   :  { %1443 = vmatpush3.bf16.msra.mxu1 %v1751_v26 }
 0x3e7   :  { %1444 = vmatprep.subr.bf16.mxu1 %v1647_v0 }
 0x3ea   :  { %1446 = vmatpush3.bf16.msra.mxu1 %v1756_v32 }
 0x3eb   :  { %1447 = vmatprep.subr.bf16.mxu1 %v1647_v0 }
 0x3ee   :  { %1449 = vmatpush3.bf16.msra.mxu1 %v1761_v37 }
 0x3ef   :  { %1450 = vmatprep.subr.bf16.mxu1 %v1647_v0 }
 0x3f2   :  { %1452 = vmatpush3.bf16.msra.mxu1 %v1798_v49 }
 0x3f3   :  { %1453 = vmatprep.subr.bf16.mxu1 %v1647_v0 }
 0x3f6   :  { %1455 = vmatpush3.bf16.msra.mxu1 %v1805_v53 }
 0x3f7   :  { %1456 = vmatprep.subr.bf16.mxu1 %v1647_v0 }
 0x3fa   :  { %1458 = vmatpush3.bf16.msra.mxu1 %v1811_v57 }
 0x3fb   :  { %1459 = vmatprep.subr.bf16.mxu1 %v1647_v0 }
 0x4b0   :  { %v559_v28 = vpop.f32.mrb[2].mxu1 }
 0x4b1   :  { %v563_v29 = vadd.f32 %v559_v28, %v259_v27  ;;  %v1185_v30 = vpop.f32.mrb[3].mxu1 }
 0x4b3   :  { %1540 = vtanh.f32 %v563_v29 }
 0x4bd   :  { %v1541_v31 = vpop.eup %1540 }
 0x4be   :  { %1219 = vmatmul.mubr.f32.vlgmr.msra.gmra.mrb[4].mxu1 %v1541_v31 }
 0x4bf   :  { %1461 = vmatpush3.bf16.msra.mxu1 %v1741_v14  ;;  %1253 = vmatprep.mubr.msk.f32.mxu1 %vm1648_vm0, %v1649_v1 }
 0x4c0   :  { %1462 = vmatprep.subr.bf16.mxu1 %v1647_v0 }
 0x4c3   :  { %1464 = vmatpush3.bf16.msra.mxu1 %v1746_v20 }
 0x4c4   :  { %1465 = vmatprep.subr.bf16.mxu1 %v1647_v0 }
 0x4c7   :  { %1467 = vmatpush3.bf16.msra.mxu1 %v1751_v26 }
 0x4c8   :  { %1468 = vmatprep.subr.bf16.mxu1 %v1647_v0 }
 0x4cb   :  { %1470 = vmatpush3.bf16.msra.mxu1 %v1756_v32 }
 0x4cc   :  { %1471 = vmatprep.subr.bf16.mxu1 %v1647_v0 }
 0x4cf   :  { %1473 = vmatpush3.bf16.msra.mxu1 %v1761_v37 }
 0x4d0   :  { %1474 = vmatprep.subr.bf16.mxu1 %v1647_v0 }
 0x4d3   :  { %1476 = vmatpush3.bf16.msra.mxu1 %v1798_v49 }
 0x4d4   :  { %1477 = vmatprep.subr.bf16.mxu1 %v1647_v0 }
 0x4d7   :  { %1479 = vmatpush3.bf16.msra.mxu1 %v1805_v53 }
 0x4d8   :  { %1480 = vmatprep.subr.bf16.mxu1 %v1647_v0 }
 0x4db   :  { %1482 = vmatpush3.bf16.msra.mxu1 %v1811_v57 }
 0x4dc   :  { %1483 = vmatprep.subr.bf16.mxu1 %v1647_v0 }
 0x591   :  { %v631_v34 = vpop.f32.mrb[4].mxu1 }
 0x592   :  { %v635_v35 = vadd.f32 %v631_v34, %v264_v33  ;;  %v1220_v36 = vpop.f32.mrb[5].mxu1 }
 0x594   :  { %1542 = vtanh.f32 %v635_v35 }
 0x59e   :  { %v1543_v38 = vpop.eup %1542 }
 0x59f   :  { %1254 = vmatmul.mubr.f32.vlgmr.msra.gmra.mrb[6].mxu1 %v1543_v38 }
 0x5a0   :  { %1485 = vmatpush3.bf16.msra.mxu1 %v1741_v14  ;;  %1288 = vmatprep.mubr.msk.f32.mxu1 %vm1648_vm0, %v1649_v1  ;;  %v269_v1 = vadd.f32 %v1825_v58, %v1847_v7 }
 0x5a1   :  { %1486 = vmatprep.subr.bf16.mxu1 %v1647_v0 }
 0x5a4   :  { %1488 = vmatpush3.bf16.msra.mxu1 %v1746_v20 }
 0x5a5   :  { %1489 = vmatprep.subr.bf16.mxu1 %v1647_v0 }
 0x5a8   :  { %1491 = vmatpush3.bf16.msra.mxu1 %v1751_v26 }
 0x5a9   :  { %1492 = vmatprep.subr.bf16.mxu1 %v1647_v0 }
 0x5ac   :  { %1494 = vmatpush3.bf16.msra.mxu1 %v1756_v32 }
 0x5ad   :  { %1495 = vmatprep.subr.bf16.mxu1 %v1647_v0 }
 0x5b0   :  { %1497 = vmatpush3.bf16.msra.mxu1 %v1761_v37  ;;  %v274_v37 = vadd.f32 %v1825_v58, %v1849_v9 }
 0x5b1   :  { %1498 = vmatprep.subr.bf16.mxu1 %v1647_v0 }
 0x5b4   :  { %1500 = vmatpush3.bf16.msra.mxu1 %v1798_v49 }
 0x5b5   :  { %1501 = vmatprep.subr.bf16.mxu1 %v1647_v0 }
 0x5b8   :  { %1503 = vmatpush3.bf16.msra.mxu1 %v1805_v53 }
 0x5b9   :  { %1504 = vmatprep.subr.bf16.mxu1 %v1647_v0 }
 0x5bc   :  { %1506 = vmatpush3.bf16.msra.mxu1 %v1811_v57 }
 0x672   :  { %v703_v14 = vpop.f32.mrb[6].mxu1 }
 0x673   :  { %v707_v20 = vadd.f32 %v703_v14, %v269_v1  ;;  %v1255_v26 = vpop.f32.mrb[7].mxu1 }
 0x675   :  { %1544 = vtanh.f32 %v707_v20 }
 0x67f   :  { %v1545_v32 = vpop.eup %1544 }
 0x680   :  { %1289 = vmatmul.mubr.f32.vlgmr.msra.gmra.mrb[8].mxu1 %v1545_v32 }
 0x753   :  { %v775_v39 = vpop.f32.mrb[8].mxu1 }
 0x754   :  { %v779_v40 = vadd.f32 %v775_v39, %v274_v37  ;;  %v1290_v41 = vpop.f32.mrb[9].mxu1 }
 0x756   :  { %1546 = vtanh.f32 %v779_v40 }
 0x760   :  { %v1547_v0 = vpop.eup %1546 }
 0x761   :  { %781 = vst [vmem:[#allocation8] sm:$0xff] %v1547_v0 }
 0x762   :  { %1625 = shalt.err (!%p1622_p0)
}
 0x763   :  { %s1626_s30 = scalar_lea.hbm %s1948_s4, 128 }
 0x764   :  { %p1627_p1 = scmp.ne.s32.totalorder %s1948_s4, %s1626_s30  ;;  %p1630_p2 = scmp.lt.u32.totalorder %s1626_s30, %s1948_s4 }
 0x766   :  { %p1632_p3 = pnand %p1630_p2, %p1627_p1 }
 0x768   :  { %1635 = shalt.err (!%p1632_p3)
}
 0x769   :  { %791 = dma.vmem_to_hbm [thread:$0]  %s789_s26, 128, %s1948_s4, [#allocation4]  }
 0x76a   :  { %1640 = dma.done.wait [#allocation4], 128  }
 0x76b   :  { %1641 = vsyncadd [#allocation4], 4294967168 }
 0x76c   :  { %795 = vsyncpa [#allocation3], 1 }
 0x76d   :  { %796 = vsyncpa [#allocation6], 1 }
 0x76e   :  { %797 = vsyncpa [#allocation4], 1 }

</bundles_post_ra>
